<compile_context>
chip_gen: v7x
topology: tpu7x:2x2x1
jax: 0.10.0
libtpu: 0.0.40
codegen_flags: <defaults>
</compile_context>

<pallas_src>
import jax
import jax.numpy as jnp
from jax.experimental import pallas as pl
from jax.experimental.pallas import tpu as pltpu

NUM_CLASSES = 6
HIDDEN = 384            # 3 x 128 lanes
C_PAD = 128             # classes padded to one full lane group (unmasked vst)
VOCAB = 100
VOCAB_PAD = 128         # vocab padded to a full lane group for the one-hot matmul
ZERO_ROW = VOCAB_PAD - 1  # guaranteed-zero embedding row (VOCAB < VOCAB_PAD)
MAX_BT = 256            # batch tile cap (MXU row dim on v6e/v7x)
MAX_S_CHUNK = 128       # per-grid-step sequence chunk


def _pick_onehot_dtype():
    """bf16 one-hot on chips with a bf16 VALU (v6e/v7x); f32 on v5e/v5p."""
    try:
        kind = jax.devices()[0].device_kind.lower()
    except Exception:
        return jnp.bfloat16
    return jnp.float32 if "v5" in kind else jnp.bfloat16


ONEHOT_DTYPE = _pick_onehot_dtype()


def _round_up(x, m):
    return ((x + m - 1) // m) * m


def classifier_head_kernel(ids_ref, mask_ref, table_ref, w_ref, b_ref,
                           out_ref, counts_ref):
    """Fused lookup + masked sum + L2 normalize + linear + sigmoid in VMEM.

    Grid = (batch_tiles, seq_chunks); counts accumulate across the seq axis in
    a VMEM scratch, head math runs once per batch tile on the last seq chunk.
    """
    s_idx = pl.program_id(1)

    @pl.when(s_idx == 0)
    def _():
        counts_ref[...] = jnp.zeros_like(counts_ref)

    ids = ids_ref[...]                     # (BT, SC) int32
    mask = mask_ref[...]                   # (BT, SC) int32
    # Fold the mask into the ids once on the small tile: masked / padded
    # positions index a guaranteed all-zero table row, so the big (BT,SC,V)
    # one-hot volume needs only the single equality compare.
    masked_ids = jnp.where(mask > 0, ids, ZERO_ROW)

    bt, sc = ids.shape
    vocab_iota = jax.lax.broadcasted_iota(jnp.int32, (bt, sc, VOCAB_PAD), 2)
    hits = masked_ids[:, :, None] == vocab_iota              # (BT, SC, V) bool
    # Per-chunk token counts; exact integers <= SC (<=128), exact in bf16.
    partial = jnp.sum(hits.astype(ONEHOT_DTYPE), axis=1)     # (BT, V)
    counts_ref[...] += partial.astype(jnp.float32)

    @pl.when(s_idx == pl.num_programs(1) - 1)
    def _():
        # Counts -> bf16 for the MXU (exact for per-id counts <= 256; a real
        # 30K-vocab encoder would need a gather path instead of one-hot).
        counts = counts_ref[...].astype(jnp.bfloat16)
        summed = jnp.dot(counts, table_ref[...],
                         preferred_element_type=jnp.float32)  # (BT, H) f32

        # F.normalize(p=2, dim=1): L2 normalization is scale invariant, so the
        # mean division (sum / clamp(count, 1e-9)) cancels and is skipped.
        sq = jnp.sum(summed * summed, axis=1, keepdims=True)  # (BT, 1)
        inv_norm = jax.lax.rsqrt(jnp.maximum(sq, 1e-24))      # == 1/max(||x||,1e-12)

        logits = jnp.dot(summed.astype(jnp.bfloat16), w_ref[...],
                         preferred_element_type=jnp.float32)  # (BT, C_PAD) f32
        # Dropout is identity at inference.
        out_ref[...] = jax.nn.sigmoid(
            logits * inv_norm + b_ref[...]).astype(out_ref.dtype)


@jax.jit
def text_classifier_forward(input_ids, attention_mask, table_pad, w_pad, b_pad):
    B, S = input_ids.shape

    # Batch tile: one tile for small batches, 256-row tiles for large ones.
    BT = min(_round_up(B, 8), MAX_BT)
    B_pad = _round_up(B, BT)
    n_bt = B_pad // BT

    # Sequence chunk: full S when small, else lane-dense 128-wide chunks.
    S_CHUNK = S if S <= MAX_S_CHUNK else MAX_S_CHUNK
    S_pad = _round_up(S, S_CHUNK)
    n_s = S_pad // S_CHUNK

    # Only tiny int32 id/mask tensors get padded in XLA (pad positions have
    # mask 0 -> mapped to the zero embedding row inside the kernel).
    ids_p = jnp.zeros((B_pad, S_pad), jnp.int32).at[:B, :S].set(
        input_ids.astype(jnp.int32))
    mask_p = jnp.zeros((B_pad, S_pad), jnp.int32).at[:B, :S].set(
        attention_mask.astype(jnp.int32))

    out_pad = pl.pallas_call(
        classifier_head_kernel,
        out_shape=jax.ShapeDtypeStruct((B_pad, C_PAD), jnp.bfloat16),
        grid=(n_bt, n_s),
        in_specs=[
            pl.BlockSpec((BT, S_CHUNK), lambda i, s: (i, s)),        # token ids
            pl.BlockSpec((BT, S_CHUNK), lambda i, s: (i, s)),        # attention mask
            pl.BlockSpec((VOCAB_PAD, HIDDEN), lambda i, s: (0, 0)),  # bf16 emb table
            pl.BlockSpec((HIDDEN, C_PAD), lambda i, s: (0, 0)),      # bf16 linear W
            pl.BlockSpec((1, C_PAD), lambda i, s: (0, 0)),           # f32 linear b
        ],
        out_specs=pl.BlockSpec((BT, C_PAD), lambda i, s: (i, 0)),
        scratch_shapes=[pltpu.VMEM((BT, VOCAB_PAD), jnp.float32)],   # counts acc
        compiler_params=pltpu.CompilerParams(
            dimension_semantics=("parallel", "arbitrary"),
        ),
    )(ids_p, mask_p, table_pad, w_pad, b_pad)

    return out_pad[:B, :NUM_CLASSES]


def reference_forward(input_ids, attention_mask, emb_table_bf16, w, b):
    """Pure-JAX reference with the original op order (for correctness check)."""
    emb = jnp.take(emb_table_bf16, input_ids, axis=0).astype(jnp.float32)   # (B,S,H)
    mask = attention_mask.astype(jnp.float32)[:, :, None]
    pooled = jnp.sum(emb * mask, axis=1) / jnp.maximum(jnp.sum(mask, axis=1), 1e-9)
    norm = jnp.maximum(jnp.linalg.norm(pooled, axis=1, keepdims=True), 1e-12)
    normalized = pooled / norm
    logits = jnp.dot(normalized, w.T, precision=jax.lax.Precision.HIGHEST) + b
    return jax.nn.sigmoid(logits)


def make_params(key):
    k_emb, k_w, k_b = jax.random.split(key, 3)
    emb_f32 = 0.02 * jax.random.normal(k_emb, (VOCAB, HIDDEN), jnp.float32)
    emb_bf16 = emb_f32.astype(jnp.bfloat16)          # table stored/shipped as bf16
    # Rows VOCAB..VOCAB_PAD-1 (incl. ZERO_ROW) stay zero.
    table_pad = jnp.zeros((VOCAB_PAD, HIDDEN), jnp.bfloat16).at[:VOCAB].set(emb_bf16)

    bound = 1.0 / jnp.sqrt(HIDDEN)
    # nn.Linear weight shape is (num_classes, hidden); pad to lane-dense (H, C_PAD).
    w = jax.random.uniform(k_w, (NUM_CLASSES, HIDDEN), jnp.float32, -bound, bound)
    b = jax.random.uniform(k_b, (NUM_CLASSES,), jnp.float32, -bound, bound)
    w_pad = jnp.zeros((HIDDEN, C_PAD), jnp.bfloat16).at[:, :NUM_CLASSES].set(
        w.T.astype(jnp.bfloat16))
    b_pad = jnp.zeros((1, C_PAD), jnp.float32).at[0, :NUM_CLASSES].set(b)
    return table_pad, emb_bf16, w, b, w_pad, b_pad


if __name__ == "__main__":
    key = jax.random.PRNGKey(0)
    k_ids, k_params = jax.random.split(key)

    B, S = 12, 16
    input_ids = jax.random.randint(k_ids, (B, S), 0, VOCAB, dtype=jnp.int32)
    # variable-length attention masks
    lengths = jnp.array([16, 12, 9, 5, 16, 1, 8, 13, 16, 7, 3, 11], dtype=jnp.int32)
    attention_mask = (jnp.arange(S)[None, :] < lengths[:, None]).astype(jnp.int32)

    table_pad, emb_bf16, w, b, w_pad, b_pad = make_params(k_params)

    out = text_classifier_forward(input_ids, attention_mask, table_pad, w_pad, b_pad)
    out = jax.block_until_ready(out)

    ref = reference_forward(input_ids, attention_mask, emb_bf16, w, b)
    assert out.shape == (B, NUM_CLASSES)
    # bf16 weights in the second matmul + bf16 output store -> bf16-level tolerance.
    assert jnp.allclose(out.astype(jnp.float32), ref, atol=1e-2, rtol=0.0), \
        "mismatch vs pure-JAX reference"

    print("KERNEL_OK")
</pallas_src>

<mosaic_0001>
module attributes {stable_mosaic.version = 11 : i64} {
  func.func @classifier_head_kernel(%arg0: i32, %arg1: i32, %arg2: memref<16x16xi32, #tpu.memory_space<vmem>>, %arg3: memref<16x16xi32, #tpu.memory_space<vmem>>, %arg4: memref<128x384xbf16, #tpu.memory_space<vmem>>, %arg5: memref<384x128xbf16, #tpu.memory_space<vmem>>, %arg6: memref<1x128xf32, #tpu.memory_space<vmem>>, %arg7: memref<16x128xbf16, #tpu.memory_space<vmem>>, %arg8: memref<16x128xf32, #tpu.memory_space<vmem>>) attributes {dimension_semantics = [#tpu.dimension_semantics<parallel>, #tpu.dimension_semantics<arbitrary>], iteration_bounds = array<i64: 1, 1>, scalar_prefetch = 0 : i64, scratch_operands = 1 : i64, tpu.core_type = #tpu.core_type<tc>, window_params = [{transform_indices = @transform_0, window_bounds = array<i64: 16, 16>}, {transform_indices = @transform_1, window_bounds = array<i64: 16, 16>}, {pipeline_mode = #tpu.pipeline_mode<synchronous>, transform_indices = @transform_2, window_bounds = array<i64: 128, 384>}, {pipeline_mode = #tpu.pipeline_mode<synchronous>, transform_indices = @transform_3, window_bounds = array<i64: 384, 128>}, {pipeline_mode = #tpu.pipeline_mode<synchronous>, transform_indices = @transform_4, window_bounds = array<i64: 1, 128>}, {transform_indices = @transform_5, window_bounds = array<i64: 16, 128>}]} {
    %c0_i32 = arith.constant 0 : i32
    %0 = arith.cmpi eq, %arg1, %c0_i32 : i32
    %1 = arith.extui %0 : i1 to i32
    %c0_i32_0 = arith.constant 0 : i32
    %2 = arith.cmpi ne, %1, %c0_i32_0 : i32
    scf.if %2 {
      %cst_11 = arith.constant 0.000000e+00 : f32
      %26 = vector.broadcast %cst_11 : f32 to vector<16x128xf32>
      %c0_12 = arith.constant 0 : index
      %c0_13 = arith.constant 0 : index
      %27 = vector.load %arg8[%c0_12, %c0_13] : memref<16x128xf32, #tpu.memory_space<vmem>>, vector<16x128xf32>
      tpu.vector_store %arg8[%c0_12, %c0_13], %26 {strides = array<i32>} : memref<16x128xf32, #tpu.memory_space<vmem>>, vector<16x128xf32>,
    } else {
    }
    %c0 = arith.constant 0 : index
    %c0_1 = arith.constant 0 : index
    %3 = vector.load %arg2[%c0, %c0_1] : memref<16x16xi32, #tpu.memory_space<vmem>>, vector<16x16xi32>
    %c0_2 = arith.constant 0 : index
    %c0_3 = arith.constant 0 : index
    %4 = vector.load %arg3[%c0_2, %c0_3] : memref<16x16xi32, #tpu.memory_space<vmem>>, vector<16x16xi32>
    %c0_i32_4 = arith.constant 0 : i32
    %5 = vector.broadcast %c0_i32_4 : i32 to vector<16x16xi32>
    %6 = arith.cmpi sgt, %4, %5 : vector<16x16xi32>
    %c127_i32 = arith.constant 127 : i32
    %7 = vector.broadcast %c127_i32 : i32 to vector<16x16xi32>
    %8 = arith.select %6, %3, %7 : vector<16x16xi1>, vector<16x16xi32>
    %9 = tpu.iota {dimensions = array<i32: 2>} : vector<16x16x128xi32>
    %10 = vector.shape_cast %8 : vector<16x16xi32> to vector<16x16x1xi32>
    %11 = vector.broadcast %10 : vector<16x16x1xi32> to vector<16x16x128xi32>
    %12 = arith.cmpi eq, %11, %9 : vector<16x16x128xi32>
    %13 = arith.extui %12 : vector<16x16x128xi1> to vector<16x16x128xi32>
    %14 = arith.sitofp %13 : vector<16x16x128xi32> to vector<16x16x128xf32>
    %15 = arith.truncf %14 : vector<16x16x128xf32> to vector<16x16x128xbf16>
    %16 = arith.extf %15 : vector<16x16x128xbf16> to vector<16x16x128xf32>
    %cst = arith.constant dense<0.000000e+00> : vector<16x128xf32>
    %17 = vector.multi_reduction <add>, %16, %cst [1] : vector<16x16x128xf32> to vector<16x128xf32>
    %18 = arith.truncf %17 : vector<16x128xf32> to vector<16x128xbf16>
    %c0_5 = arith.constant 0 : index
    %c0_6 = arith.constant 0 : index
    %19 = vector.load %arg8[%c0_5, %c0_6] : memref<16x128xf32, #tpu.memory_space<vmem>>, vector<16x128xf32>
    %20 = arith.extf %18 : vector<16x128xbf16> to vector<16x128xf32>
    %21 = arith.addf %19, %20 : vector<16x128xf32>
    %c0_7 = arith.constant 0 : index
    %c0_8 = arith.constant 0 : index
    %22 = vector.load %arg8[%c0_7, %c0_8] : memref<16x128xf32, #tpu.memory_space<vmem>>, vector<16x128xf32>
    tpu.vector_store %arg8[%c0_7, %c0_8], %21 {strides = array<i32>} : memref<16x128xf32, #tpu.memory_space<vmem>>, vector<16x128xf32>,
    %c0_i32_9 = arith.constant 0 : i32
    %23 = arith.cmpi eq, %arg1, %c0_i32_9 : i32
    %24 = arith.extui %23 : i1 to i32
    %c0_i32_10 = arith.constant 0 : i32
    %25 = arith.cmpi ne, %24, %c0_i32_10 : i32
    scf.if %25 {
      %c0_11 = arith.constant 0 : index
      %c0_12 = arith.constant 0 : index
      %26 = vector.load %arg8[%c0_11, %c0_12] : memref<16x128xf32, #tpu.memory_space<vmem>>, vector<16x128xf32>
      %27 = arith.truncf %26 : vector<16x128xf32> to vector<16x128xbf16>
      %c0_13 = arith.constant 0 : index
      %c0_14 = arith.constant 0 : index
      %28 = vector.load %arg4[%c0_13, %c0_14] : memref<128x384xbf16, #tpu.memory_space<vmem>>, vector<128x384xbf16>
      %cst_15 = arith.constant dense<0.000000e+00> : vector<16x384xf32>
      %29 = tpu.matmul %27, %28, %cst_15 {dimension_numbers = #tpu.dot_dimension_numbers<[1], [0], [0], [1], [0, 0, 1, 1], [], []>} : vector<16x128xbf16>, vector<128x384xbf16>, vector<16x384xf32> -> vector<16x384xf32>
      %30 = arith.mulf %29, %29 : vector<16x384xf32>
      %cst_16 = arith.constant dense<0.000000e+00> : vector<16xf32>
      %31 = vector.multi_reduction <add>, %30, %cst_16 [1] : vector<16x384xf32> to vector<16xf32>
      %32 = vector.shape_cast %31 : vector<16xf32> to vector<16x1xf32>
      %cst_17 = arith.constant 1.000000e-24 : f32
      %33 = vector.broadcast %cst_17 : f32 to vector<16x1xf32>
      %34 = arith.maximumf %32, %33 : vector<16x1xf32>
      %35 = math.rsqrt %34 : vector<16x1xf32>
      %36 = arith.truncf %29 : vector<16x384xf32> to vector<16x384xbf16>
      %c0_18 = arith.constant 0 : index
      %c0_19 = arith.constant 0 : index
      %37 = vector.load %arg5[%c0_18, %c0_19] : memref<384x128xbf16, #tpu.memory_space<vmem>>, vector<384x128xbf16>
      %cst_20 = arith.constant dense<0.000000e+00> : vector<16x128xf32>
      %38 = tpu.matmul %36, %37, %cst_20 {dimension_numbers = #tpu.dot_dimension_numbers<[1], [0], [0], [1], [0, 0, 1, 1], [], []>} : vector<16x384xbf16>, vector<384x128xbf16>, vector<16x128xf32> -> vector<16x128xf32>
      %39 = vector.broadcast %35 : vector<16x1xf32> to vector<16x128xf32>
      %40 = arith.mulf %38, %39 : vector<16x128xf32>
      %c0_21 = arith.constant 0 : index
      %c0_22 = arith.constant 0 : index
      %41 = vector.load %arg6[%c0_21, %c0_22] : memref<1x128xf32, #tpu.memory_space<vmem>>, vector<1x128xf32>
      %42 = vector.broadcast %41 : vector<1x128xf32> to vector<16x128xf32>
      %43 = arith.addf %40, %42 : vector<16x128xf32>
      %44 = arith.negf %43 : vector<16x128xf32>
      %45 = math.exp %44 : vector<16x128xf32>
      %cst_23 = arith.constant 1.000000e+00 : f32
      %46 = vector.broadcast %cst_23 : f32 to vector<16x128xf32>
      %47 = arith.addf %46, %45 : vector<16x128xf32>
      %48 = arith.divf %46, %47 : vector<16x128xf32>
      %49 = arith.truncf %48 : vector<16x128xf32> to vector<16x128xbf16>
      %c0_24 = arith.constant 0 : index
      %c0_25 = arith.constant 0 : index
      %50 = vector.load %arg7[%c0_24, %c0_25] : memref<16x128xbf16, #tpu.memory_space<vmem>>, vector<16x128xbf16>
      tpu.vector_store %arg7[%c0_24, %c0_25], %49 {strides = array<i32>} : memref<16x128xbf16, #tpu.memory_space<vmem>>, vector<16x128xbf16>,
    } else {
    }
    return
  }
  func.func @transform_0(%arg0: i32, %arg1: i32) -> (i32, i32) {
    %c0_i32 = arith.constant 0 : i32
    return %arg0, %arg1 : i32, i32
  }
  func.func @transform_1(%arg0: i32, %arg1: i32) -> (i32, i32) {
    %c0_i32 = arith.constant 0 : i32
    return %arg0, %arg1 : i32, i32
  }
  func.func @transform_2(%arg0: i32, %arg1: i32) -> (i32, i32) {
    %c0_i32 = arith.constant 0 : i32
    %c0_i32_0 = arith.constant 0 : i32
    %c0_i32_1 = arith.constant 0 : i32
    return %c0_i32, %c0_i32_0 : i32, i32
  }
  func.func @transform_3(%arg0: i32, %arg1: i32) -> (i32, i32) {
    %c0_i32 = arith.constant 0 : i32
    %c0_i32_0 = arith.constant 0 : i32
    %c0_i32_1 = arith.constant 0 : i32
    return %c0_i32, %c0_i32_0 : i32, i32
  }
  func.func @transform_4(%arg0: i32, %arg1: i32) -> (i32, i32) {
    %c0_i32 = arith.constant 0 : i32
    %c0_i32_0 = arith.constant 0 : i32
    %c0_i32_1 = arith.constant 0 : i32
    return %c0_i32, %c0_i32_0 : i32, i32
  }
  func.func @transform_5(%arg0: i32, %arg1: i32) -> (i32, i32) {
    %c0_i32 = arith.constant 0 : i32
    %c0_i32_0 = arith.constant 0 : i32
    return %arg0, %c0_i32 : i32, i32
  }
}

</mosaic_0001>

<bundles_post_ra>
// kernel: text_classifier_forward.1
= control target key start
LH: loop header
LB: loop body
LE: loop exit
PB: predicated region body
PF: predicated region fallthrough
CT: control target
= control target key end

     0   :  { %10 = vsyncpa [#allocation4], 0  ;;  %s1683_s0 = inlined_call_operand.vmem [shape: s32[16,16], index: 0, kind: input, shape index: {}]   ;;  %s1684_s1 = inlined_call_operand.vmem [shape: s32[16,16], index: 1, kind: input, shape index: {}]   ;;  %s1685_s2 = inlined_call_operand.hbm [shape: bf16[128,384], index: 2, kind: input, shape index: {}]   ;;  %s1686_s3 = inlined_call_operand.hbm [shape: bf16[384,128], index: 3, kind: input, shape index: {}]   ;;  %s1687_s4 = inlined_call_operand.vmem [shape: f32[1,128], index: 4, kind: input, shape index: {}]   ;;  %s1688_s5 = inlined_call_operand.vmem [shape: bf16[16,128], index: 5, kind: output, shape index: {}]  }
   0x1   :  { %11 = vsyncpa [#allocation6], 0  ;;  %s1455_s18 = smov [#allocation3]   ;;  %s1407_s22 = scalar_lea.hbm %s1685_s2, 3072 }
   0x2   :  { %s21_s19 = sshll.u32 %s1455_s18, 4  ;;  %p1408_p0 = scmp.ne.s32.totalorder %s1685_s2, %s1407_s22  ;;  %s22_s19 = int_to_ptr.vmem [resolvable:$true] %s21_s19 }
   0x3   :  { %p1411_p1 = scmp.lt.u32.totalorder %s1407_s22, %s1685_s2 }
   0x5   :  { %p1413_p2 = pnand %p1411_p1, %p1408_p0 }
   0x7   :  { %1416 = shalt.err (!%p1413_p2)
}
   0x8   :  { %s1417_s27 = scalar_lea.vmem %s22_s19, 3072  ;;  %p1422_p4 = scmp.lt.s32.totalorder %s22_s19, %s22_s19 }
   0x9   :  { %p1418_p3 = scmp.ne.s32.totalorder %s22_s19, %s1417_s27  ;;  %p1423_p5 = scmp.lt.s32.totalorder %s1417_s27, %s1417_s27 }
   0xb   :  { %p1424_p6 = por %p1423_p5, %p1422_p4 }
   0xd   :  { %p1425_p7 = pnand %p1424_p6, %p1418_p3 }
   0xf   :  { %1428 = shalt.err (!%p1425_p7)
}
  0x10   :  { %s1456_s28 = smov 192   ;;  %s1457_s29 = smov 12  }
  0x11   :  { %27 = dma.hbm_to_vmem [thread:$0]  %s1685_s2, 3072, %s22_s19, [#allocation4], %s1456_s28, %s1456_s28, %s1457_s29  }
  0x12   :  { %s1458_s7 = smov [#allocation5]   ;;  %s1429_s11 = scalar_lea.hbm %s1686_s3, 3072 }
  0x13   :  { %s33_s8 = sshll.u32 %s1458_s7, 4  ;;  %p1430_p8 = scmp.ne.s32.totalorder %s1686_s3, %s1429_s11  ;;  %s34_s8 = int_to_ptr.vmem [resolvable:$true] %s33_s8 }
  0x14   :  { %p1433_p9 = scmp.lt.u32.totalorder %s1429_s11, %s1686_s3 }
  0x16   :  { %p1435_p10 = pnand %p1433_p9, %p1430_p8 }
  0x18   :  { %1438 = shalt.err (!%p1435_p10)
}
  0x19   :  { %s1439_s16 = scalar_lea.vmem %s34_s8, 3072  ;;  %p1444_p12 = scmp.lt.s32.totalorder %s34_s8, %s34_s8 }
  0x1a   :  { %p1440_p11 = scmp.ne.s32.totalorder %s34_s8, %s1439_s16  ;;  %p1445_p13 = scmp.lt.s32.totalorder %s1439_s16, %s1439_s16 }
  0x1c   :  { %p1446_p0 = por %p1445_p13, %p1444_p12 }
  0x1e   :  { %p1447_p1 = pnand %p1446_p0, %p1440_p11 }
  0x20   :  { %1450 = shalt.err (!%p1447_p1)
}
  0x21   :  { %s1459_s2 = smov 64   ;;  %s1460_s17 = smov 4  }
  0x22   :  { %39 = dma.hbm_to_vmem [thread:$0]  %s1686_s3, 3072, %s34_s8, [#allocation6], %s1459_s2, %s1459_s2, %s1460_s17  }
  0x23   :  { %1451 = dma.done.wait [#allocation4], 3072  }
  0x24   :  { %1452 = vsyncadd [#allocation4], 4294964224 }
  0x25   :  { %1453 = dma.done.wait [#allocation6], 3072  }
  0x26   :  { %1454 = vsyncadd [#allocation6], 4294964224  ;;  %v63_v0 = vlaneseq  ;;  %v1461_v1 = vmov 0.0   ;;  %v55_v5 = vld [vmem:[%s1683_s0] sm:$0xff]  ;;  %v58_v7 = vld [vmem:[%s1684_s1 + $0x8] sm:$0xff]  ;;  %v1462_v57 = vmov 0  }
  0x27   :  { %1290 = vmatprep.subr.bf16.mxu1 %v1461_v1  ;;  %v57_v6 = vld [vmem:[%s1684_s1] sm:$0xff]  ;;  %v56_v9 = vld [vmem:[%s1683_s0 + $0x8] sm:$0xff]  ;;  %vm60_vm1 = vcmp.gt.s32.totalorder %v58_v7, 0  ;;  %v1349_v35 = vld [vmem:[#allocation3 + $0x30] ss:$12 sps:$4 sm:$0xff]   ;;  %772 = vmatprep.mubr.bf16.mxu0 %v1462_v57  ;;  %vm1463_vm2 = vmmov 0  }
  0x28   :  { %v1520_v2 = vshrl.u32 %v63_v0, 7  ;;  %vm59_vm0 = vcmp.gt.s32.totalorder %v57_v6, 0  ;;  %v1540_v12 = vsel %vm60_vm1, %v56_v9, 127  ;;  %v1339_v25 = vld [vmem:[#allocation3 + $0x4] ss:$12 sps:$4 sm:$0xff]   ;;  %1306 = vmatprep.mubr.msk.bf16.mxu1 %vm1463_vm2, %v1461_v1  ;;  %v1573_v63 = vand.u32 127, %v63_v0 }
  0x29   :  { %v1533_v8 = vsel %vm59_vm0, %v55_v5, 127  ;;  %v1341_v26 = vld [vmem:[#allocation3] ss:$12 sps:$4 sm:$0xff]   ;;  %v1342_v27 = vld [vmem:[#allocation3 + $0x8] ss:$12 sps:$4 sm:$0xff]   ;;  %740 = vmatprep.subr.bf16.mxu0 %v1339_v25 }
  0x2a   :  { %v78_v3 = vsub.s32 1, %v1520_v2  ;;  %v67_v4 = vsub.s32 0, %v1520_v2  ;;  %v89_v14 = vsub.s32 2, %v1520_v2  ;;  %v100_v16 = vsub.s32 3, %v1520_v2  ;;  %1291 = vmatpush3.bf16.msra.mxu1 %v1342_v27  ;;  %741 = vmatpush1.bf16.msra.mxu0 %v1341_v26  ;;  %v1343_v29 = vld [vmem:[#allocation3 + $0x1c] ss:$12 sps:$4 sm:$0xff]  }
  0x2b   :  { %v111_v20 = vsub.s32 4, %v1520_v2  ;;  %v122_v24 = vsub.s32 5, %v1520_v2  ;;  %1292 = vmatprep.subr.bf16.mxu1 %v1461_v1  ;;  %v1345_v30 = vld [vmem:[#allocation3 + $0x18] ss:$12 sps:$4 sm:$0xff]   ;;  %v1346_v31 = vld [vmem:[#allocation3 + $0x20] ss:$12 sps:$4 sm:$0xff]   ;;  %742 = vmatprep.subr.bf16.mxu0 %v1343_v29 }
  0x2c   :  { %v79_v10 = vrot.slane %v1533_v8, %v78_v3  ;;  %v68_v11 = vrot.slane %v1533_v8, %v67_v4  ;;  %v156_v13 = vrot.slane %v1540_v12, %v67_v4  ;;  %v167_v15 = vrot.slane %v1540_v12, %v78_v3  ;;  %v1347_v34 = vld [vmem:[#allocation3 + $0x34] ss:$12 sps:$4 sm:$0xff]   ;;  %v1350_v36 = vld [vmem:[#allocation3 + $0x38] ss:$12 sps:$4 sm:$0xff]   ;;  %v1354_v40 = vld [vmem:[#allocation3 + $0x50] ss:$12 sps:$4 sm:$0xff]  }
  0x2d   :  { %v90_v17 = vrot.slane %v1533_v8, %v89_v14  ;;  %v178_v18 = vrot.slane %v1540_v12, %v89_v14  ;;  %v101_v19 = vrot.slane %v1533_v8, %v100_v16  ;;  %v189_v21 = vrot.slane %v1540_v12, %v100_v16  ;;  %v1351_v38 = vld [vmem:[#allocation3 + $0x4c] ss:$12 sps:$4 sm:$0xff]   ;;  %v1353_v39 = vld [vmem:[#allocation3 + $0x48] ss:$12 sps:$4 sm:$0xff]   ;;  %v1355_v43 = vld [vmem:[#allocation3 + $0x64] ss:$12 sps:$4 sm:$0xff]  }
  0x2e   :  { %81 = vbcast.lane.b32.xlu1 %v79_v10, 256  ;;  %70 = vbcast.lane.b32.xlu0 %v68_v11, 256  ;;  %v112_v22 = vrot.slane %v1533_v8, %v111_v20  ;;  %v200_v23 = vrot.slane %v1540_v12, %v111_v20  ;;  %v123_v28 = vrot.slane %v1533_v8, %v122_v24  ;;  %v133_v33 = vsub.s32 6, %v1520_v2  ;;  %v1357_v44 = vld [vmem:[#allocation3 + $0x60] ss:$12 sps:$4 sm:$0xff]  }
  0x2f   :  { %v211_v32 = vrot.slane %v1540_v12, %v122_v24  ;;  %1293 = vmatpush3.bf16.msra.mxu1 %v1346_v31  ;;  %743 = vmatpush1.bf16.msra.mxu0 %v1345_v30  ;;  %v144_v42 = vsub.s32 7, %v1520_v2  ;;  %v1358_v45 = vld [vmem:[#allocation3 + $0x68] ss:$12 sps:$4 sm:$0xff]   ;;  %v1361_v48 = vld [vmem:[#allocation3 + $0x78] ss:$12 sps:$4 sm:$0xff]  }
  0x30   :  { %1294 = vmatprep.subr.bf16.mxu1 %v1461_v1  ;;  %v134_v37 = vrot.slane %v1533_v8, %v133_v33  ;;  %744 = vmatprep.subr.bf16.mxu0 %v1347_v34  ;;  %v222_v41 = vrot.slane %v1540_v12, %v133_v33  ;;  %v1359_v47 = vld [vmem:[#allocation3 + $0x7c] ss:$12 sps:$4 sm:$0xff]   ;;  %v1362_v49 = vld [vmem:[#allocation3 + $0x80] ss:$12 sps:$4 sm:$0xff]   ;;  %v1366_v53 = vld [vmem:[#allocation3 + $0x98] ss:$12 sps:$4 sm:$0xff]  }
  0x31   :  { %v145_v46 = vrot.slane %v1533_v8, %v144_v42  ;;  %v233_v50 = vrot.slane %v1540_v12, %v144_v42  ;;  %v1363_v51 = vld [vmem:[#allocation3 + $0x94] ss:$12 sps:$4 sm:$0xff]   ;;  %v1365_v52 = vld [vmem:[#allocation3 + $0x90] ss:$12 sps:$4 sm:$0xff]   ;;  %v1367_v54 = vld [vmem:[#allocation3 + $0xac] ss:$12 sps:$4 sm:$0xff]  }
  0x32   :  { %85 = vbcast.lane.b32.xlu1 %v79_v10, 264  ;;  %74 = vbcast.lane.b32.xlu0 %v68_v11, 264  ;;  %v1370_v55 = vld [vmem:[#allocation3 + $0xb0] ss:$12 sps:$4 sm:$0xff]   ;;  %v1369_v56 = vld [vmem:[#allocation3 + $0xa8] ss:$12 sps:$4 sm:$0xff]  }
  0x33   :  { %1295 = vmatpush3.bf16.msra.mxu1 %v1350_v36  ;;  %745 = vmatpush1.bf16.msra.mxu0 %v1349_v35  ;;  %v1372_v58 = vld [vmem:[#allocation5 + $0x40] sm:$0xff]  }
  0x34   :  { %1296 = vmatprep.subr.bf16.mxu1 %v1461_v1  ;;  %746 = vmatprep.subr.bf16.mxu0 %v1351_v38 }
  0x36   :  { %162 = vbcast.lane.b32.xlu1 %v156_v13, 264  ;;  %158 = vbcast.lane.b32.xlu0 %v156_v13, 256 }
  0x37   :  { %1297 = vmatpush3.bf16.msra.mxu1 %v1354_v40  ;;  %747 = vmatpush1.bf16.msra.mxu0 %v1353_v39 }
  0x38   :  { %1298 = vmatprep.subr.bf16.mxu1 %v1461_v1  ;;  %748 = vmatprep.subr.bf16.mxu0 %v1355_v43 }
  0x3a   :  { %173 = vbcast.lane.b32.xlu1 %v167_v15, 264  ;;  %169 = vbcast.lane.b32.xlu0 %v167_v15, 256 }
  0x3b   :  { %1299 = vmatpush3.bf16.msra.mxu1 %v1358_v45  ;;  %749 = vmatpush1.bf16.msra.mxu0 %v1357_v44 }
  0x3c   :  { %1300 = vmatprep.subr.bf16.mxu1 %v1461_v1  ;;  %750 = vmatprep.subr.bf16.mxu0 %v1359_v47 }
  0x3e   :  { %96 = vbcast.lane.b32.xlu1 %v90_v17, 264  ;;  %92 = vbcast.lane.b32.xlu0 %v90_v17, 256 }
  0x3f   :  { %1301 = vmatpush3.bf16.msra.mxu1 %v1362_v49  ;;  %751 = vmatpush1.bf16.msra.mxu0 %v1361_v48 }
  0x40   :  { %1302 = vmatprep.subr.bf16.mxu1 %v1461_v1  ;;  %752 = vmatprep.subr.bf16.mxu0 %v1363_v51 }
  0x42   :  { %184 = vbcast.lane.b32.xlu1 %v178_v18, 264  ;;  %180 = vbcast.lane.b32.xlu0 %v178_v18, 256 }
  0x43   :  { %1303 = vmatpush3.bf16.msra.mxu1 %v1366_v53  ;;  %753 = vmatpush1.bf16.msra.mxu0 %v1365_v52 }
  0x44   :  { %1304 = vmatprep.subr.bf16.mxu1 %v1461_v1  ;;  %754 = vmatprep.subr.bf16.mxu0 %v1367_v54 }
  0x46   :  { %107 = vbcast.lane.b32.xlu1 %v101_v19, 264  ;;  %103 = vbcast.lane.b32.xlu0 %v101_v19, 256 }
  0x47   :  { %1305 = vmatpush3.bf16.msra.mxu1 %v1370_v55  ;;  %755 = vmatpush1.bf16.msra.mxu0 %v1369_v56 }
  0x48   :  { %1310 = vmatprep.subr.bf16.mxu1 %v1461_v1  ;;  %1259 = vmatprep.subr.bf16.mxu0 %v1372_v58 }
  0x4a   :  { %195 = vbcast.lane.b32.xlu1 %v189_v21, 264  ;;  %191 = vbcast.lane.b32.xlu0 %v189_v21, 256 }
  0x4e   :  { %118 = vbcast.lane.b32.xlu1 %v112_v22, 264  ;;  %114 = vbcast.lane.b32.xlu0 %v112_v22, 256 }
  0x52   :  { %206 = vbcast.lane.b32.xlu1 %v200_v23, 264  ;;  %202 = vbcast.lane.b32.xlu0 %v200_v23, 256 }
  0x56   :  { %129 = vbcast.lane.b32.xlu1 %v123_v28, 264  ;;  %125 = vbcast.lane.b32.xlu0 %v123_v28, 256 }
  0x5a   :  { %217 = vbcast.lane.b32.xlu1 %v211_v32, 264  ;;  %213 = vbcast.lane.b32.xlu0 %v211_v32, 256 }
  0x5e   :  { %140 = vbcast.lane.b32.xlu1 %v134_v37, 264  ;;  %136 = vbcast.lane.b32.xlu0 %v134_v37, 256 }
  0x62   :  { %228 = vbcast.lane.b32.xlu1 %v222_v41, 264  ;;  %224 = vbcast.lane.b32.xlu0 %v222_v41, 256 }
  0x66   :  { %151 = vbcast.lane.b32.xlu1 %v145_v46, 264  ;;  %147 = vbcast.lane.b32.xlu0 %v145_v46, 256 }
  0x6a   :  { %239 = vbcast.lane.b32.xlu1 %v233_v50, 264  ;;  %235 = vbcast.lane.b32.xlu0 %v233_v50, 256 }
  0xa0   :  { %v82_v59 = vpop.permute.xlu1 %81  ;;  %v71_v60 = vpop.permute.xlu0 %70 }
  0xa1   :  { %vm243_vm5 = vcmp.eq.s32.totalorder %v82_v59, %v1573_v63  ;;  %vm241_vm6 = vcmp.eq.s32.totalorder %v71_v60, %v1573_v63 }
  0xa2   :  { %v1160_v8 = vsel %vm243_vm5, 1.0, %v1461_v1  ;;  %v1158_v0 = vsel %vm241_vm6, 1.0, %v1461_v1 }
  0xa4   :  { %v86_v61 = vpop.permute.xlu1 %85  ;;  %v75_v62 = vpop.permute.xlu0 %74 }
  0xa5   :  { %vm244_vm3 = vcmp.eq.s32.totalorder %v86_v61, %v1573_v63  ;;  %vm242_vm4 = vcmp.eq.s32.totalorder %v75_v62, %v1573_v63 }
  0xa6   :  { %v1161_v4 = vsel %vm244_vm3, 1.0, %v1461_v1  ;;  %v1159_v5 = vsel %vm242_vm4, 1.0, %v1461_v1 }
  0xa7   :  { %v392_v9 = vadd.f32 %v1161_v4, %v1160_v8  ;;  %v385_v10 = vadd.f32 %v1159_v5, %v1158_v0 }
  0xa8   :  { %v163_v2 = vpop.permute.xlu1 %162  ;;  %v159_v3 = vpop.permute.xlu0 %158 }
  0xa9   :  { %vm258_vm7 = vcmp.eq.s32.totalorder %v163_v2, %v1573_v63  ;;  %vm257_vm8 = vcmp.eq.s32.totalorder %v159_v3, %v1573_v63  ;;  %v393_v13 = vrot.slane %v392_v9, 4  ;;  %v386_v14 = vrot.slane %v385_v10, 4 }
  0xaa   :  { %v1175_v15 = vsel %vm258_vm7, 1.0, %v1461_v1  ;;  %v1174_v16 = vsel %vm257_vm8, 1.0, %v1461_v1 }
  0xab   :  { %v394_v19 = vadd.f32 %v393_v13, %v392_v9  ;;  %v387_v20 = vadd.f32 %v386_v14, %v385_v10  ;;  %v441_v21 = vadd.f32 %v1175_v15, %v1174_v16 }
  0xac   :  { %v174_v6 = vpop.permute.xlu1 %173  ;;  %v170_v7 = vpop.permute.xlu0 %169 }
  0xad   :  { %vm260_vm9 = vcmp.eq.s32.totalorder %v174_v6, %v1573_v63  ;;  %vm259_vm10 = vcmp.eq.s32.totalorder %v170_v7, %v1573_v63  ;;  %v395_v26 = vrot.slane %v394_v19, 2  ;;  %v388_v28 = vrot.slane %v387_v20, 2 }
  0xae   :  { %v1177_v22 = vsel %vm260_vm9, 1.0, %v1461_v1  ;;  %v1176_v23 = vsel %vm259_vm10, 1.0, %v1461_v1  ;;  %v442_v29 = vrot.slane %v441_v21, 4 }
  0xaf   :  { %v448_v27 = vadd.f32 %v1177_v22, %v1176_v23  ;;  %v396_v34 = vadd.f32 %v395_v26, %v394_v19  ;;  %v389_v40 = vadd.f32 %v388_v28, %v387_v20 }
  0xb0   :  { %v97_v11 = vpop.permute.xlu1 %96  ;;  %v93_v12 = vpop.permute.xlu0 %92  ;;  %v443_v36 = vadd.f32 %v442_v29, %v441_v21 }
  0xb1   :  { %vm246_vm11 = vcmp.eq.s32.totalorder %v97_v11, %v1573_v63  ;;  %vm245_vm12 = vcmp.eq.s32.totalorder %v93_v12, %v1573_v63  ;;  %v449_v35 = vrot.slane %v448_v27, 4  ;;  %v397_v47 = vrot.slane %v396_v34, 1 }
  0xb2   :  { %v1163_v30 = vsel %vm246_vm11, 1.0, %v1461_v1  ;;  %v1162_v31 = vsel %vm245_vm12, 1.0, %v1461_v1  ;;  %v444_v50 = vrot.slane %v443_v36, 2  ;;  %v390_v58 = vrot.slane %v389_v40, 1 }
  0xb3   :  { %v399_v37 = vadd.f32 %v1163_v30, %v1162_v31  ;;  %v450_v48 = vadd.f32 %v449_v35, %v448_v27  ;;  %v398_v60 = vadd.f32 %v397_v47, %v396_v34 }
  0xb4   :  { %v185_v17 = vpop.permute.xlu1 %184  ;;  %v181_v18 = vpop.permute.xlu0 %180  ;;  %v445_v2 = vadd.f32 %v444_v50, %v443_v36  ;;  %v391_v10 = vadd.f32 %v390_v58, %v389_v40 }
  0xb5   :  { %vm262_vm13 = vcmp.eq.s32.totalorder %v185_v17, %v1573_v63  ;;  %vm261_vm14 = vcmp.eq.s32.totalorder %v181_v18, %v1573_v63  ;;  %v400_v51 = vrot.slane %v399_v37, 4  ;;  %v451_v61 = vrot.slane %v450_v48, 2 }
  0xb6   :  { %v1179_v38 = vsel %vm262_vm13, 1.0, %v1461_v1  ;;  %v1178_v39 = vsel %vm261_vm14, 1.0, %v1461_v1  ;;  %v498_v15 = vpack.c.bf16 %v398_v60, %v398_v60  ;;  %v446_v16 = vrot.slane %v445_v2, 1 }
  0xb7   :  { %v455_v49 = vadd.f32 %v1179_v38, %v1178_v39  ;;  %v401_v3 = vadd.f32 %v400_v51, %v399_v37  ;;  %v452_v12 = vadd.f32 %v451_v61, %v450_v48 }
  0xb8   :  { %v108_v24 = vpop.permute.xlu1 %107  ;;  %v104_v25 = vpop.permute.xlu0 %103  ;;  %v1622_v30 = vadd.f32 %v446_v16, %v445_v2  ;;  %v1625_v39 = vunpack.c.l.bf16 %v498_v15 }
  0xb9   :  { %vm248_vm15 = vcmp.eq.s32.totalorder %v108_v24, %v1573_v63  ;;  %vm247_vm0 = vcmp.eq.s32.totalorder %v104_v25, %v1573_v63  ;;  %v456_v62 = vrot.slane %v455_v49, 4  ;;  %v402_v17 = vrot.slane %v401_v3, 2 }
  0xba   :  { %v1165_v41 = vsel %vm248_vm15, 1.0, %v1461_v1  ;;  %v1164_v42 = vsel %vm247_vm0, 1.0, %v1461_v1  ;;  %v497_v24 = vpack.c.bf16 %v391_v10, %v391_v10  ;;  %v453_v26 = vrot.slane %v452_v12, 1 }
  0xbb   :  { %v406_v54 = vadd.f32 %v1165_v41, %v1164_v42  ;;  %v457_v13 = vadd.f32 %v456_v62, %v455_v49  ;;  %v505_v49 = vpack.c.bf16 %v1622_v30, %v1622_v30 }
  0xbc   :  { %v196_v32 = vpop.permute.xlu1 %195  ;;  %v192_v33 = vpop.permute.xlu0 %191  ;;  %v1629_v41 = vunpack.c.l.bf16 %v497_v24  ;;  %v1631_v42 = vadd.f32 %v453_v26, %v452_v12 }
  0xbd   :  { %vm264_vm1 = vcmp.eq.s32.totalorder %v196_v32, %v1573_v63  ;;  %vm263_vm3 = vcmp.eq.s32.totalorder %v192_v33, %v1573_v63  ;;  %v407_v6 = vrot.slane %v406_v54, 4  ;;  %v458_v27 = vrot.slane %v457_v13, 2 }
  0xbe   :  { %v1181_v45 = vsel %vm264_vm1, 1.0, %v1461_v1  ;;  %v1180_v46 = vsel %vm263_vm3, 1.0, %v1461_v1  ;;  %v403_v33 = vadd.f32 %v402_v17, %v401_v3  ;;  %vm547_vm3 = vcmask 1041409  }
  0xbf   :  { %v462_v55 = vadd.f32 %v1181_v45, %v1180_v46  ;;  %v408_v18 = vadd.f32 %v407_v6, %v406_v54  ;;  %v548_v30 = vsel %vm547_vm3, %v1625_v39, %v1629_v41 }
  0xc0   :  { %v119_v43 = vpop.permute.xlu1 %118  ;;  %v115_v44 = vpop.permute.xlu0 %114  ;;  %v404_v50 = vrot.slane %v403_v33, 1 }
  0xc1   :  { %vm250_vm4 = vcmp.eq.s32.totalorder %v119_v43, %v1573_v63  ;;  %vm249_vm5 = vcmp.eq.s32.totalorder %v115_v44, %v1573_v63  ;;  %v463_v7 = vrot.slane %v462_v55, 4  ;;  %v409_v34 = vrot.slane %v408_v18, 2 }
  0xc2   :  { %v1167_v52 = vsel %vm250_vm4, 1.0, %v1461_v1  ;;  %v1166_v53 = vsel %vm249_vm5, 1.0, %v1461_v1  ;;  %v459_v43 = vadd.f32 %v458_v27, %v457_v13  ;;  %vm549_vm4 = vcmask 1042434  }
  0xc3   :  { %v413_v59 = vadd.f32 %v1167_v52, %v1166_v53  ;;  %v464_v19 = vadd.f32 %v463_v7, %v462_v55  ;;  %v410_v51 = vadd.f32 %v409_v34, %v408_v18 }
  0xc4   :  { %v207_v56 = vpop.permute.xlu1 %206  ;;  %v203_v57 = vpop.permute.xlu0 %202  ;;  %v460_v58 = vrot.slane %v459_v43, 1 }
  0xc5   :  { %vm266_vm6 = vcmp.eq.s32.totalorder %v207_v56, %v1573_v63  ;;  %vm265_vm7 = vcmp.eq.s32.totalorder %v203_v57, %v1573_v63  ;;  %v414_v11 = vrot.slane %v413_v59, 4  ;;  %v465_v35 = vrot.slane %v464_v19, 2 }
  0xc6   :  { %v1183_v4 = vsel %vm266_vm6, 1.0, %v1461_v1  ;;  %v1182_v5 = vsel %vm265_vm7, 1.0, %v1461_v1  ;;  %v506_v57 = vpack.c.bf16 %v1631_v42, %v1631_v42  ;;  %v461_v15 = vadd.f32 %v460_v58, %v459_v43 }
  0xc7   :  { %v469_v8 = vadd.f32 %v1183_v4, %v1182_v5  ;;  %v415_v25 = vadd.f32 %v414_v11, %v413_v59  ;;  %v466_v52 = vadd.f32 %v465_v35, %v464_v19  ;;  %v405_v4 = vadd.f32 %v404_v50, %v403_v33 }
  0xc8   :  { %v130_v0 = vpop.permute.xlu1 %129  ;;  %v126_v9 = vpop.permute.xlu0 %125  ;;  %v411_v5 = vrot.slane %v410_v51, 1  ;;  %vm551_vm7 = vcmask 1043459  }
  0xc9   :  { %vm252_vm8 = vcmp.eq.s32.totalorder %v130_v0, %v1573_v63  ;;  %vm251_vm9 = vcmp.eq.s32.totalorder %v126_v9, %v1573_v63  ;;  %v470_v14 = vrot.slane %v469_v8, 4  ;;  %v416_v40 = vrot.slane %v415_v25, 2 }
  0xca   :  { %v1169_v20 = vsel %vm252_vm8, 1.0, %v1461_v1  ;;  %v1168_v21 = vsel %vm251_vm9, 1.0, %v1461_v1  ;;  %v467_v6 = vrot.slane %v466_v52, 1  ;;  %v412_v19 = vadd.f32 %v411_v5, %v410_v51 }
  0xcb   :  { %v471_v28 = vadd.f32 %v470_v14, %v469_v8  ;;  %v420_v31 = vadd.f32 %v1169_v20, %v1168_v21  ;;  %v417_v55 = vadd.f32 %v416_v40, %v415_v25  ;;  %vm553_vm8 = vcmask 1044484  }
  0xcc   :  { %v218_v22 = vpop.permute.xlu1 %217  ;;  %v214_v23 = vpop.permute.xlu0 %213  ;;  %v468_v20 = vadd.f32 %v467_v6, %v466_v52  ;;  %vm555_vm9 = vcmask 1045509   ;;  %v500_v42 = vpack.c.bf16 %v412_v19, %v412_v19 }
  0xcd   :  { %vm268_vm10 = vcmp.eq.s32.totalorder %v218_v22, %v1573_v63  ;;  %vm267_vm11 = vcmp.eq.s32.totalorder %v214_v23, %v1573_v63  ;;  %v472_v44 = vrot.slane %v471_v28, 2  ;;  %v421_v45 = vrot.slane %v420_v31, 4 }
  0xce   :  { %v1185_v29 = vsel %vm268_vm10, 1.0, %v1461_v1  ;;  %v1184_v32 = vsel %vm267_vm11, 1.0, %v1461_v1  ;;  %v418_v9 = vrot.slane %v417_v55, 1  ;;  %v508_v43 = vpack.c.bf16 %v468_v20, %v468_v20  ;;  %v1371_v20 = vld [vmem:[#allocation5 + $0x80] sm:$0xff]  }
  0xcf   :  { %v476_v36 = vadd.f32 %v1185_v29, %v1184_v32  ;;  %v473_v59 = vadd.f32 %v472_v44, %v471_v28  ;;  %v422_v61 = vadd.f32 %v421_v45, %v420_v31  ;;  %v523_v45 = vunpack.c.l.bf16 %v505_v49 }
  0xd0   :  { %v141_v37 = vpop.permute.xlu1 %140  ;;  %v137_v38 = vpop.permute.xlu0 %136  ;;  %v419_v25 = vadd.f32 %v418_v9, %v417_v55  ;;  %vm557_vm10 = vcmask 1046534   ;;  %vm559_vm11 = vcmask 1047559  }
  0xd1   :  { %vm254_vm12 = vcmp.eq.s32.totalorder %v141_v37, %v1573_v63  ;;  %vm253_vm13 = vcmp.eq.s32.totalorder %v137_v38, %v1573_v63  ;;  %v477_v46 = vrot.slane %v476_v36, 4  ;;  %v474_v11 = vrot.slane %v473_v59, 1 }
  0xd2   :  { %v1171_v47 = vsel %vm254_vm12, 1.0, %v1461_v1  ;;  %v1170_v48 = vsel %vm253_vm13, 1.0, %v1461_v1  ;;  %v423_v16 = vrot.slane %v422_v61, 2  ;;  %v507_v37 = vpack.c.bf16 %v461_v15, %v461_v15 }
  0xd3   :  { %v427_v56 = vadd.f32 %v1171_v47, %v1170_v48  ;;  %v478_v62 = vadd.f32 %v477_v46, %v476_v36  ;;  %v475_v27 = vadd.f32 %v474_v11, %v473_v59  ;;  %v499_v36 = vpack.c.bf16 %v405_v4, %v405_v4 }
  0xd4   :  { %v229_v53 = vpop.permute.xlu1 %228  ;;  %v225_v54 = vpop.permute.xlu0 %224  ;;  %v424_v32 = vadd.f32 %v423_v16, %v422_v61  ;;  %v524_v46 = vunpack.c.l.bf16 %v506_v57  ;;  %v501_v47 = vpack.c.bf16 %v419_v25, %v419_v25  ;;  %v525_v55 = vunpack.c.l.bf16 %v507_v37  ;;  %v1376_v25 = vld [vmem:[#allocation5 + $0x8] sm:$0xff]  }
  0xd5   :  { %vm270_vm14 = vcmp.eq.s32.totalorder %v229_v53, %v1573_v63  ;;  %vm269_vm15 = vcmp.eq.s32.totalorder %v225_v54, %v1573_v63  ;;  %v428_v2 = vrot.slane %v427_v56, 4  ;;  %v479_v17 = vrot.slane %v478_v62, 2  ;;  %v1386_v37 = vld [vmem:[#allocation5 + $0xa8] sm:$0xff]  }
  0xd6   :  { %v1187_v60 = vsel %vm270_vm14, 1.0, %v1461_v1  ;;  %v1186_v3 = vsel %vm269_vm15, 1.0, %v1461_v1  ;;  %v509_v48 = vpack.c.bf16 %v475_v27, %v475_v27  ;;  %v425_v50 = vrot.slane %v424_v32, 1  ;;  %v1377_v27 = vld [vmem:[#allocation5 + $0x90] sm:$0xff]  }
  0xd7   :  { %v483_v7 = vadd.f32 %v1187_v60, %v1186_v3  ;;  %v429_v10 = vadd.f32 %v428_v2, %v427_v56  ;;  %v480_v33 = vadd.f32 %v479_v17, %v478_v62  ;;  %v517_v54 = vunpack.c.l.bf16 %v499_v36  ;;  %v1387_v36 = vld [vmem:[#allocation5 + $0x68] sm:$0xff]  }
  0xd8   :  { %v152_v8 = vpop.permute.xlu1 %151  ;;  %v148_v0 = vpop.permute.xlu0 %147  ;;  %v518_v59 = vunpack.c.l.bf16 %v500_v42  ;;  %v526_v60 = vunpack.c.l.bf16 %v508_v43  ;;  %v519_v49 = vunpack.c.l.bf16 %v501_v47  ;;  %v527_v57 = vunpack.c.l.bf16 %v509_v48  ;;  %v1389_v42 = vld [vmem:[#allocation5 + $0xb0] sm:$0xff]  }
  0xd9   :  { %vm256_vm0 = vcmp.eq.s32.totalorder %v152_v8, %v1573_v63  ;;  %vm255_vm1 = vcmp.eq.s32.totalorder %v148_v0, %v1573_v63  ;;  %v484_v12 = vrot.slane %v483_v7, 4  ;;  %v430_v21 = vrot.slane %v429_v10, 2  ;;  %v1391_v43 = vld [vmem:[#allocation5 + $0x30] sm:$0xff]  }
  0xda   :  { %v1173_v13 = vsel %vm256_vm0, 1.0, %v1461_v1  ;;  %v1172_v14 = vsel %vm255_vm1, 1.0, %v1461_v1  ;;  %v481_v51 = vrot.slane %v480_v33, 1  ;;  %v561_v2 = vsel %vm547_vm3, %v524_v46, %v523_v45  ;;  %v1394_v45 = vld [vmem:[#allocation5 + $0x38] sm:$0xff]  }
  0xdb   :  { %v434_v18 = vadd.f32 %v1173_v13, %v1172_v14  ;;  %v485_v22 = vadd.f32 %v484_v12, %v483_v7  ;;  %v431_v38 = vadd.f32 %v430_v21, %v429_v10  ;;  %v426_v3 = vadd.f32 %v425_v50, %v424_v32  ;;  %v1373_v21 = vld [vmem:[#allocation5] sm:$0xff]   ;;  %v1382_v32 = vld [vmem:[#allocation5 + $0x18] sm:$0xff]  }
  0xdc   :  { %v240_v23 = vpop.permute.xlu1 %239  ;;  %v236_v24 = vpop.permute.xlu0 %235  ;;  %v482_v4 = vadd.f32 %v481_v51, %v480_v33  ;;  %v550_v6 = vsel %vm549_vm4, %v517_v54, %v548_v30  ;;  %v562_v7 = vsel %vm549_vm4, %v525_v55, %v561_v2  ;;  %v1384_v33 = vld [vmem:[#allocation5 + $0x60] sm:$0xff]  }
  0xdd   :  { %v435_v26 = vrot.slane %v434_v18, 4  ;;  %vm272_vm5 = vcmp.eq.s32.totalorder %v240_v23, %v1573_v63  ;;  %vm271_vm6 = vcmp.eq.s32.totalorder %v236_v24, %v1573_v63  ;;  %v486_v28 = vrot.slane %v485_v22, 2  ;;  %v1375_v23 = vld [vmem:[#allocation5 + $0x48] sm:$0xff]  }
  0xde   :  { %v1189_v29 = vsel %vm272_vm5, 1.0, %v1461_v1  ;;  %v1188_v31 = vsel %vm271_vm6, 1.0, %v1461_v1  ;;  %v432_v56 = vrot.slane %v431_v38, 1  ;;  %v552_v11 = vsel %vm551_vm7, %v518_v59, %v550_v6  ;;  %v1374_v24 = vld [vmem:[#allocation5 + $0x88] sm:$0xff]  }
  0xdf   :  { %v436_v34 = vadd.f32 %v435_v26, %v434_v18  ;;  %v490_v35 = vadd.f32 %v1189_v29, %v1188_v31  ;;  %v487_v40 = vadd.f32 %v486_v28, %v485_v22  ;;  %v563_v39 = vsel %vm551_vm7, %v526_v60, %v562_v7  ;;  %v1378_v26 = vld [vmem:[#allocation5 + $0x50] sm:$0xff]   ;;  %v1381_v29 = vld [vmem:[#allocation5 + $0x58] sm:$0xff]  }
  0xe0   :  { %v433_v8 = vadd.f32 %v432_v56, %v431_v38  ;;  %v554_v41 = vsel %vm553_vm8, %v519_v49, %v552_v11  ;;  %v564_v12 = vsel %vm553_vm8, %v527_v57, %v563_v39  ;;  %v1379_v28 = vld [vmem:[#allocation5 + $0x10] sm:$0xff]   ;;  %v1380_v31 = vld [vmem:[#allocation5 + $0x98] sm:$0xff]   ;;  %v1388_v38 = vld [vmem:[#allocation5 + $0x28] sm:$0xff]  }
  0xe1   :  { %v437_v63 = vrot.slane %v436_v34, 2  ;;  %v491_v44 = vrot.slane %v490_v35, 4  ;;  %v488_v58 = vrot.slane %v487_v40, 1  ;;  %v556_v14 = vsel %vm555_vm9, %v426_v3, %v554_v41 }
  0xe2   :  { %v565_v15 = vsel %vm555_vm9, %v482_v4, %v564_v12  ;;  %v558_v16 = vsel %vm557_vm10, %v433_v8, %v556_v14 }
  0xe3   :  { %v438_v52 = vadd.f32 %v437_v63, %v436_v34  ;;  %v492_v53 = vadd.f32 %v491_v44, %v490_v35  ;;  %v489_v0 = vadd.f32 %v488_v58, %v487_v40  ;;  %v1383_v34 = vld [vmem:[#allocation5 + $0xa0] sm:$0xff]   ;;  %v1390_v40 = vld [vmem:[#allocation5 + $0x70] sm:$0xff]   ;;  %v1392_v63 = vld [vmem:[#allocation5 + $0xb8] sm:$0xff]  }
  0xe4   :  { %v1385_v35 = vld [vmem:[#allocation5 + $0x20] sm:$0xff]   ;;  %v1393_v44 = vld [vmem:[#allocation5 + $0x78] sm:$0xff]  }
  0xe5   :  { %v439_v61 = vrot.slane %v438_v52, 1  ;;  %v493_v62 = vrot.slane %v492_v53, 2  ;;  %v566_v17 = vsel %vm557_vm10, %v489_v0, %v565_v15 }
  0xe7   :  { %v494_v5 = vadd.f32 %v493_v62, %v492_v53  ;;  %v440_v9 = vadd.f32 %v439_v61, %v438_v52 }
  0xe9   :  { %v495_v10 = vrot.slane %v494_v5, 1  ;;  %v560_v18 = vsel %vm559_vm11, %v440_v9, %v558_v16 }
  0xeb   :  { %v496_v13 = vadd.f32 %v495_v10, %v494_v5 }
  0xed   :  { %v567_v19 = vsel %vm559_vm11, %v496_v13, %v566_v17  ;;  %v1238_v17 = vld [vmem:[%s1687_s4] ss:$0 sm:$0xff] }
  0xee   :  { %v579_v22 = vpack.c.bf16 %v567_v19, %v560_v18 }
  0xf0   :  { %773 = vmatmul.mubr.bf16.vlgmr.msra.gmra.mrb[0].mxu0 %v579_v22  ;;  %1307 = vmatmul.mubr.bf16.vlgmr.msra.gmra.mrb[0].mxu1 %v579_v22 }
  0xf1   :  { %1311 = vmatpush3.bf16.msra.mxu1 %v1371_v20  ;;  %1260 = vmatpush3.bf16.msra.mxu0 %v1373_v21 }
  0xf2   :  { %1312 = vmatprep.subr.bf16.mxu1 %v1461_v1  ;;  %1261 = vmatprep.subr.bf16.mxu0 %v1375_v23 }
  0xf3   :  { %1326 = vmatprep.mubr.msk.bf16.mxu1 %vm1463_vm2, %v1461_v1 }
  0xf5   :  { %1313 = vmatpush3.bf16.msra.mxu1 %v1374_v24  ;;  %1262 = vmatpush3.bf16.msra.mxu0 %v1376_v25 }
  0xf6   :  { %1314 = vmatprep.subr.bf16.mxu1 %v1461_v1  ;;  %1263 = vmatprep.subr.bf16.mxu0 %v1378_v26 }
  0xf9   :  { %1315 = vmatpush3.bf16.msra.mxu1 %v1377_v27  ;;  %1264 = vmatpush3.bf16.msra.mxu0 %v1379_v28 }
  0xfa   :  { %1316 = vmatprep.subr.bf16.mxu1 %v1461_v1  ;;  %1265 = vmatprep.subr.bf16.mxu0 %v1381_v29 }
  0xfd   :  { %1317 = vmatpush3.bf16.msra.mxu1 %v1380_v31  ;;  %1266 = vmatpush3.bf16.msra.mxu0 %v1382_v32 }
  0xfe   :  { %1318 = vmatprep.subr.bf16.mxu1 %v1461_v1  ;;  %1267 = vmatprep.subr.bf16.mxu0 %v1384_v33 }
 0x101   :  { %1319 = vmatpush3.bf16.msra.mxu1 %v1383_v34  ;;  %1268 = vmatpush3.bf16.msra.mxu0 %v1385_v35 }
 0x102   :  { %1320 = vmatprep.subr.bf16.mxu1 %v1461_v1  ;;  %1269 = vmatprep.subr.bf16.mxu0 %v1387_v36 }
 0x105   :  { %1321 = vmatpush3.bf16.msra.mxu1 %v1386_v37  ;;  %1270 = vmatpush3.bf16.msra.mxu0 %v1388_v38 }
 0x106   :  { %1322 = vmatprep.subr.bf16.mxu1 %v1461_v1  ;;  %1271 = vmatprep.subr.bf16.mxu0 %v1390_v40 }
 0x109   :  { %1323 = vmatpush3.bf16.msra.mxu1 %v1389_v42  ;;  %1272 = vmatpush3.bf16.msra.mxu0 %v1391_v43 }
 0x10a   :  { %1324 = vmatprep.subr.bf16.mxu1 %v1461_v1  ;;  %1273 = vmatprep.subr.bf16.mxu0 %v1393_v44 }
 0x10d   :  { %1325 = vmatpush3.bf16.msra.mxu1 %v1392_v63  ;;  %1274 = vmatpush3.bf16.msra.mxu0 %v1394_v45 }
 0x1c3   :  { %v774_v46 = vpop.f32.mrb[0].mxu0  ;;  %v817_v47 = vpop.f32.mrb[0].mxu1 }
 0x1c4   :  { %v824_v48 = vmul.f32 %v774_v46, %v774_v46  ;;  %v776_v50 = vpop.f32.mrb[1].mxu0  ;;  %v1308_v51 = vpop.f32.mrb[1].mxu1  ;;  %v826_v60 = vmul.f32 %v817_v47, %v817_v47 }
 0x1c5   :  { %v825_v52 = vmul.f32 %v776_v50, %v776_v50  ;;  %v778_v53 = vpop.f32.mrb[2].mxu0  ;;  %v820_v54 = vpop.f32.mrb[2].mxu1 }
 0x1c6   :  { %v827_v55 = vmul.f32 %v778_v53, %v778_v53  ;;  %v842_v56 = vpack.c.bf16 %v778_v53, %v774_v46  ;;  %v844_v58 = vpack.c.bf16 %v820_v54, %v817_v47  ;;  %v780_v1 = vpop.f32.mrb[3].mxu0  ;;  %v1309_v59 = vpop.f32.mrb[3].mxu1  ;;  %v829_v49 = vmul.f32 %v820_v54, %v820_v54 }
 0x1c7   :  { %v828_v61 = vmul.f32 %v780_v1, %v780_v1  ;;  %v843_v62 = vpack.c.bf16 %v780_v1, %v776_v50  ;;  %v830_v30 = vadd.f32 %v825_v52, %v824_v48 }
 0x1c8   :  { %1327 = vmatmul.mubr.bf16.vlgmr.msra.gmra.mrb[4].mxu1 %v844_v58 }
 0x1c9   :  { %1069 = vmatprep.mubr.bf16.mxu0 %v843_v62  ;;  %v831_v57 = vadd.f32 %v830_v30, %v826_v60  ;;  %v834_v2 = vadd.f32 %v828_v61, %v827_v55 }
 0x1ca   :  { %1070 = vmatmul.mubr.bf16.vlgmr.msra.gmra.mrb[4].mxu0 %v842_v56 }
 0x1cb   :  { %832 = vadd.xlane.f32.xlu0 %v831_v57  ;;  %v835_v3 = vadd.f32 %v834_v2, %v829_v49 }
 0x1cd   :  { %836 = vadd.xlane.f32.xlu1 %v835_v3 }
 0x258   :  { %v833_v4 = vpop.xlane.xlu0 %832 }
 0x259   :  { %v838_v6 = vmax.f32 %v833_v4, 1e-24 }
 0x25a   :  { %v837_v5 = vpop.xlane.xlu1 %836 }
 0x25b   :  { %v839_v7 = vmax.f32 %v837_v5, 1e-24  ;;  %1395 = vrsqrt.f32 %v838_v6 }
 0x25d   :  { %1397 = vrsqrt.f32 %v839_v7 }
 0x265   :  { %v1396_v16 = vpop.eup %1395 }
 0x267   :  { %v1398_v20 = vpop.eup %1397 }
 0x29b   :  { %v1112_v8 = vpop.f32.mrb[4].mxu1 }
 0x29c   :  { %v1328_v0 = vpop.f32.mrb[5].mxu1 }
 0x29d   :  { %v1275_v9 = vpop.f32.mrb[4].mxu0  ;;  %v1115_v10 = vpop.f32.mrb[6].mxu1 }
 0x29e   :  { %v1276_v11 = vpop.f32.mrb[5].mxu0  ;;  %v1329_v39 = vpop.f32.mrb[7].mxu1 }
 0x29f   :  { %v1277_v41 = vadd.f32 %v1276_v11, %v1275_v9  ;;  %v1278_v12 = vpop.f32.mrb[6].mxu0 }
 0x2a0   :  { %v1279_v13 = vpop.f32.mrb[7].mxu0 }
 0x2a1   :  { %v1113_v14 = vadd.f32 %v1277_v41, %v1112_v8  ;;  %v1280_v15 = vadd.f32 %v1279_v13, %v1278_v12 }
 0x2a3   :  { %v1119_v18 = vmul.f32 %v1396_v16, %v1113_v14  ;;  %v1116_v19 = vadd.f32 %v1280_v15, %v1115_v10 }
 0x2a5   :  { %v1128_v21 = vadd.f32 %v1238_v17, %v1119_v18  ;;  %v1120_v22 = vmul.f32 %v1398_v20, %v1116_v19 }
 0x2a7   :  { %v1239_v23 = vmul.f32 -1.442695, %v1128_v21  ;;  %v1129_v24 = vadd.f32 %v1238_v17, %v1120_v22 }
 0x2a9   :  { %1399 = vpow2.f32 %v1239_v23  ;;  %v1240_v25 = vmul.f32 -1.442695, %v1129_v24 }
 0x2ab   :  { %1401 = vpow2.f32 %v1240_v25 }
 0x2b3   :  { %v1400_v26 = vpop.eup %1399 }
 0x2b4   :  { %v1136_v27 = vadd.f32 1.0, %v1400_v26 }
 0x2b5   :  { %v1402_v28 = vpop.eup %1401 }
 0x2b6   :  { %v1137_v29 = vadd.f32 1.0, %v1402_v28  ;;  %1403 = vrcp.f32 %v1136_v27 }
 0x2b8   :  { %1405 = vrcp.f32 %v1137_v29 }
 0x2c0   :  { %v1404_v31 = vpop.eup %1403 }
 0x2c2   :  { %v1406_v32 = vpop.eup %1405 }
 0x2c3   :  { %v1248_v33 = vpack.c.bf16 %v1406_v32, %v1404_v31 }
 0x2c5   :  { %1249 = vst [vmem:[%s1688_s5] sm:$0xff] %v1248_v33  }
 0x2c6   :  { %1156 = vsyncpa [#allocation4], 1 }
 0x2c7   :  { %1157 = vsyncpa [#allocation6], 1 }

</bundles_post_ra>
